<compile_context>
chip_gen: v7x
topology: tpu7x:2x2x1
jax: 0.10.0
libtpu: 0.0.40
codegen_flags: <defaults>
</compile_context>

<pallas_src>
import functools

import jax
import jax.numpy as jnp
from jax.experimental import pallas as pl
from jax.experimental.pallas import tpu as pltpu


def _round_up(v, m):
    return ((v + m - 1) // m) * m


def _rise_fused_kernel(masks_ref, weff_ref, b_ref, sal_ref, *, cl_sal):
    """One (split, N-tile) step of the fused RISE forward.

    masks_ref: (TN, HW)   bf16  streamed tile of flattened masks
    weff_ref : (HW, CLp)  bf16  resident folded + prescaled classifier weights
    b_ref    : (1, CLp)   f32   resident prescaled bias
    sal_ref  : (CLs, HW)  f32   resident per-split saliency accumulator
    """
    step = pl.program_id(1)  # reduction axis (N tiles within this split)

    @pl.when(step == 0)
    def _init():
        sal_ref[...] = jnp.zeros_like(sal_ref)

    m = masks_ref[...]                                       # (TN, HW) bf16

    # Surrogate classifier with the input image folded into the weights:
    #   p = (masks * x).reshape(TN, C*HW) @ W + b  ==  masks @ W_eff + b
    p = jnp.dot(m, weff_ref[...], preferred_element_type=jnp.float32)
    p = p + b_ref[...]                                       # (TN, CLp) f32

    # Only the first cl_sal logit rows are real; the rest of CLp is lane
    # padding for the classifier matmul.
    # NOTE: p is cast to bf16 for the MXU sal contraction; keep f32 here if
    # tighter logit fidelity is ever required.
    p_c = p[:, :cl_sal].astype(jnp.bfloat16)                 # (TN, CLs)

    # sal += p^T @ masks_tile (contract the N-tile axis), f32 accumulation.
    # lhs contracting dim 0 -> XLU transpose of the small (TN, CLs) operand;
    # it stays off the critical path while the MXU owns the step.
    sal_ref[...] += jax.lax.dot_general(
        p_c, m,
        dimension_numbers=(((0,), (0,)), ((), ())),
        preferred_element_type=jnp.float32,
    )


def rise_forward(x, masks, w_cls, b_cls, p1, *, n_tile=1024, num_splits=2):
    """x: (1, C, H, W), masks: (N, 1, H, W), w_cls: (C*H*W, CL), b_cls: (CL,)."""
    N = masks.shape[0]
    _, C, H, W = x.shape
    HW = H * W
    CL = w_cls.shape[1]
    scale = 1.0 / (float(N) * float(p1))

    # ---- Algebraic folds, done once in the wrapper in f32 -------------------
    x_2d = x.reshape(C, HW).astype(jnp.float32)
    w3 = w_cls.reshape(C, HW, CL).astype(jnp.float32)
    w_eff = jnp.einsum("ch,chk->hk", x_2d, w3) * scale        # (HW, CL) f32
    b_eff = b_cls.astype(jnp.float32) * scale                 # (CL,)

    # CLp: classifier-matmul output lanes (mult of 128, free on the MXU).
    # CLs: saliency rows / resident accumulator sublanes (mult of 8 only).
    CLp = max(_round_up(CL, 128), 128)
    CLs = max(_round_up(CL, 8), 8)
    weff_p = jnp.pad(w_eff, ((0, 0), (0, CLp - CL))).astype(jnp.bfloat16)
    b_p = jnp.pad(b_eff, (0, CLp - CL)).reshape(1, CLp)

    # ---- N tiling: few fat steps, split across (up to) 2 TensorCores --------
    masks_2d = masks.reshape(N, HW).astype(jnp.bfloat16)
    TN = min(n_tile, max(8, _round_up(pl.cdiv(N, num_splits), 8)))
    N_pad = _round_up(N, num_splits * TN)
    if N_pad != N:
        # Padded mask rows are exactly zero -> their p^T @ m contribution is 0.
        masks_2d = jnp.pad(masks_2d, ((0, N_pad - N), (0, 0)))
    steps = N_pad // (num_splits * TN)
    grid = (num_splits, steps)

    masks_index_map = lambda s, i: (s * steps + i, 0)
    if steps >= 3:
        # Deeper masks pipeline: after the x-fold the kernel is masks-stream
        # bound, so extra buffering hides DMA bubbles at tile boundaries.
        masks_spec = pl.BlockSpec((TN, HW), masks_index_map,
                                  pipeline_mode=pl.Buffered(3))
        n_mask_bufs = 3
    else:
        masks_spec = pl.BlockSpec((TN, HW), masks_index_map)
        n_mask_bufs = 2

    # ---- VMEM plan (bytes) ---------------------------------------------------
    vmem_need = (
        n_mask_bufs * 2 * TN * HW          # streamed masks tiles (bf16)
        + 2 * (2 * HW * CLp)               # resident W_eff (bf16)
        + 2 * (4 * 8 * CLp)                # bias (f32, sublane padded)
        + 2 * (4 * CLs * HW)               # per-split f32 sal accumulator
    )
    try:
        vmem_cap = int(pltpu.get_tpu_info().vmem_capacity_bytes)
    except Exception:
        vmem_cap = 64 * 1024 * 1024        # conservative (v7x per-TC)
    # TODO(synk): if CLs*HW*4 + HW*CLp*2 ever approaches vmem_cap (huge HW*CL),
    # add a CL-block grid axis so only a slice of W_eff / sal is resident.
    vmem_limit = int(min(vmem_cap - 4 * 1024 * 1024,
                         max(2 * vmem_need, 32 * 1024 * 1024)))

    kernel = functools.partial(_rise_fused_kernel, cl_sal=CLs)
    partials = pl.pallas_call(
        kernel,
        out_shape=jax.ShapeDtypeStruct((num_splits, CLs, HW), jnp.float32),
        grid_spec=pltpu.PrefetchScalarGridSpec(
            num_scalar_prefetch=0,
            grid=grid,
            in_specs=[
                masks_spec,                                    # streamed masks
                pl.BlockSpec((HW, CLp), lambda s, i: (0, 0)),  # resident W_eff
                pl.BlockSpec((1, CLp), lambda s, i: (0, 0)),   # resident bias
            ],
            out_specs=pl.BlockSpec((None, CLs, HW), lambda s, i: (s, 0, 0)),
        ),
        compiler_params=pltpu.CompilerParams(
            # Axis 0: independent N halves (megacore-parallel on v7x, cheap
            # serial loop on v5e/v6e).  Axis 1: N reduction into the resident
            # sal accumulator.
            dimension_semantics=("parallel", "arbitrary"),
            vmem_limit_bytes=vmem_limit,
        ),
    )(masks_2d, weff_p, b_p)

    sal = partials.sum(axis=0)[:CL]        # combine per-core partials, drop pad
    return sal.reshape(CL, H, W)


if __name__ == "__main__":
    key = jax.random.PRNGKey(0)
    k_x, k_m, k_w, k_b = jax.random.split(key, 4)

    # Small shapes consistent with the module's forward; N spans both splits.
    N, C, H, W, CL = 256, 4, 16, 16, 8
    p1 = 0.5
    HW = H * W

    x = jax.random.normal(k_x, (1, C, H, W), dtype=jnp.float32)
    # Deterministic stand-in for generate_masks (random grid + bilinear resize).
    # TODO(synk): skimage-style reflect-mode bilinear upsample of a bernoulli grid.
    masks = jax.random.uniform(k_m, (N, 1, H, W), dtype=jnp.float32)

    # Deterministic surrogate-classifier parameters.
    w_cls = jax.random.normal(k_w, (C * HW, CL), dtype=jnp.float32) * 0.02
    b_cls = jax.random.normal(k_b, (CL,), dtype=jnp.float32) * 0.1

    sal = rise_forward(x, masks, w_cls, b_cls, p1)
    sal = jax.block_until_ready(sal)

    # Pure-JAX reference mirroring the kernel's algebra and quantisation points
    # (mask/W_eff/p in bf16 where the kernel casts, f32 accumulation).
    scale = 1.0 / (N * p1)
    masks_q = masks.reshape(N, HW).astype(jnp.bfloat16).astype(jnp.float32)
    w_eff_ref = jnp.einsum("ch,chk->hk", x.reshape(C, HW),
                           w_cls.reshape(C, HW, CL)) * scale
    w_eff_q = w_eff_ref.astype(jnp.bfloat16).astype(jnp.float32)
    p_ref = masks_q @ w_eff_q + b_cls * scale
    p_ref = p_ref.astype(jnp.bfloat16).astype(jnp.float32)
    sal_ref = (p_ref.T @ masks_q).reshape(CL, H, W)

    assert sal.shape == (CL, H, W)
    assert jnp.allclose(sal, sal_ref, atol=2e-2, rtol=2e-2), "mismatch vs reference"

    print("KERNEL_OK")
</pallas_src>

<mosaic_0001>
module attributes {stable_mosaic.version = 11 : i64} {
  func.func @_rise_fused_kernel(%arg0: i32, %arg1: i32, %arg2: memref<128x256xbf16, #tpu.memory_space<vmem>>, %arg3: memref<256x128xbf16, #tpu.memory_space<vmem>>, %arg4: memref<1x128xf32, #tpu.memory_space<vmem>>, %arg5: memref<1x8x256xf32, #tpu.memory_space<vmem>>) attributes {dimension_semantics = [#tpu.dimension_semantics<parallel>, #tpu.dimension_semantics<arbitrary>], iteration_bounds = array<i64: 2, 1>, scalar_prefetch = 0 : i64, scratch_operands = 0 : i64, tpu.core_type = #tpu.core_type<tc>, window_params = [{transform_indices = @transform_0, window_bounds = array<i64: 128, 256>}, {pipeline_mode = #tpu.pipeline_mode<synchronous>, transform_indices = @transform_1, window_bounds = array<i64: 256, 128>}, {pipeline_mode = #tpu.pipeline_mode<synchronous>, transform_indices = @transform_2, window_bounds = array<i64: 1, 128>}, {transform_indices = @transform_3, window_bounds = array<i64: 1, 8, 256>}]} {
    %c0_i32 = arith.constant 0 : i32
    %0 = arith.cmpi eq, %arg1, %c0_i32 : i32
    %1 = arith.extui %0 : i1 to i32
    %c0_i32_0 = arith.constant 0 : i32
    %2 = arith.cmpi ne, %1, %c0_i32_0 : i32
    scf.if %2 {
      %cst_13 = arith.constant 0.000000e+00 : f32
      %18 = vector.broadcast %cst_13 : f32 to vector<8x256xf32>
      %c0_14 = arith.constant 0 : index
      %c0_15 = arith.constant 0 : index
      %c0_16 = arith.constant 0 : index
      %19 = vector.load %arg5[%c0_14, %c0_15, %c0_16] : memref<1x8x256xf32, #tpu.memory_space<vmem>>, vector<1x8x256xf32>
      %20 = vector.shape_cast %19 : vector<1x8x256xf32> to vector<8x256xf32>
      %21 = vector.shape_cast %18 : vector<8x256xf32> to vector<1x8x256xf32>
      tpu.vector_store %arg5[%c0_14, %c0_15, %c0_16], %21 {strides = array<i32>} : memref<1x8x256xf32, #tpu.memory_space<vmem>>, vector<1x8x256xf32>,
    } else {
    }
    %c0 = arith.constant 0 : index
    %c0_1 = arith.constant 0 : index
    %3 = vector.load %arg2[%c0, %c0_1] : memref<128x256xbf16, #tpu.memory_space<vmem>>, vector<128x256xbf16>
    %c0_2 = arith.constant 0 : index
    %c0_3 = arith.constant 0 : index
    %4 = vector.load %arg3[%c0_2, %c0_3] : memref<256x128xbf16, #tpu.memory_space<vmem>>, vector<256x128xbf16>
    %cst = arith.constant dense<0.000000e+00> : vector<128x128xf32>
    %5 = tpu.matmul %3, %4, %cst {dimension_numbers = #tpu.dot_dimension_numbers<[1], [0], [0], [1], [0, 0, 1, 1], [], []>} : vector<128x256xbf16>, vector<256x128xbf16>, vector<128x128xf32> -> vector<128x128xf32>
    %c0_4 = arith.constant 0 : index
    %c0_5 = arith.constant 0 : index
    %6 = vector.load %arg4[%c0_4, %c0_5] : memref<1x128xf32, #tpu.memory_space<vmem>>, vector<1x128xf32>
    %7 = vector.broadcast %6 : vector<1x128xf32> to vector<128x128xf32>
    %8 = arith.addf %5, %7 : vector<128x128xf32>
    %9 = vector.extract_strided_slice %8 {offsets = [0, 0], sizes = [128, 8], strides = [1, 1]} : vector<128x128xf32> to vector<128x8xf32>
    %10 = arith.truncf %9 : vector<128x8xf32> to vector<128x8xbf16>
    %c0_6 = arith.constant 0 : index
    %c0_7 = arith.constant 0 : index
    %c0_8 = arith.constant 0 : index
    %11 = vector.load %arg5[%c0_6, %c0_7, %c0_8] : memref<1x8x256xf32, #tpu.memory_space<vmem>>, vector<1x8x256xf32>
    %12 = vector.shape_cast %11 : vector<1x8x256xf32> to vector<8x256xf32>
    %cst_9 = arith.constant dense<0.000000e+00> : vector<8x256xf32>
    %13 = tpu.matmul %10, %3, %cst_9 {dimension_numbers = #tpu.dot_dimension_numbers<[0], [0], [1], [1], [0, 1, 1, 1], [], []>} : vector<128x8xbf16>, vector<128x256xbf16>, vector<8x256xf32> -> vector<8x256xf32>
    %14 = arith.addf %12, %13 : vector<8x256xf32>
    %c0_10 = arith.constant 0 : index
    %c0_11 = arith.constant 0 : index
    %c0_12 = arith.constant 0 : index
    %15 = vector.load %arg5[%c0_10, %c0_11, %c0_12] : memref<1x8x256xf32, #tpu.memory_space<vmem>>, vector<1x8x256xf32>
    %16 = vector.shape_cast %15 : vector<1x8x256xf32> to vector<8x256xf32>
    %17 = vector.shape_cast %14 : vector<8x256xf32> to vector<1x8x256xf32>
    tpu.vector_store %arg5[%c0_10, %c0_11, %c0_12], %17 {strides = array<i32>} : memref<1x8x256xf32, #tpu.memory_space<vmem>>, vector<1x8x256xf32>,
    return
  }
  func.func @transform_0(%arg0: i32, %arg1: i32) -> (i32, i32) {
    %c1_i32 = arith.constant 1 : i32
    %0 = arith.muli %arg0, %c1_i32 : i32
    %1 = arith.addi %0, %arg1 : i32
    %c0_i32 = arith.constant 0 : i32
    %c0_i32_0 = arith.constant 0 : i32
    return %1, %c0_i32 : i32, i32
  }
  func.func @transform_1(%arg0: i32, %arg1: i32) -> (i32, i32) {
    %c0_i32 = arith.constant 0 : i32
    %c0_i32_0 = arith.constant 0 : i32
    %c0_i32_1 = arith.constant 0 : i32
    return %c0_i32, %c0_i32_0 : i32, i32
  }
  func.func @transform_2(%arg0: i32, %arg1: i32) -> (i32, i32) {
    %c0_i32 = arith.constant 0 : i32
    %c0_i32_0 = arith.constant 0 : i32
    %c0_i32_1 = arith.constant 0 : i32
    return %c0_i32, %c0_i32_0 : i32, i32
  }
  func.func @transform_3(%arg0: i32, %arg1: i32) -> (i32, i32, i32) {
    %c0_i32 = arith.constant 0 : i32
    %c0_i32_0 = arith.constant 0 : i32
    %c0_i32_1 = arith.constant 0 : i32
    return %arg0, %c0_i32, %c0_i32_0 : i32, i32, i32
  }
}

</mosaic_0001>

<bundles_post_ra>
// kernel: tpu_custom_call.1
= control target key start
LH: loop header
LB: loop body
LE: loop exit
PB: predicated region body
PF: predicated region fallthrough
CT: control target
= control target key end

     0   :  { %8 = vsyncpa [#allocation3], 0  ;;  %s1400_s0 = inlined_call_operand.hbm [shape: bf16[256,256], index: 0, kind: input, shape index: {}]   ;;  %s1401_s1 = inlined_call_operand.hbm [shape: bf16[256,128], index: 1, kind: input, shape index: {}]   ;;  %s1402_s2 = inlined_call_operand.vmem [shape: f32[1,128], index: 2, kind: input, shape index: {}]   ;;  %s1403_s3 = inlined_call_operand.hbm [shape: f32[2,8,256], index: 3, kind: output, shape index: {}]  }
   0x1   :  { %10 = vsyncpa [#allocation3 + $0x1], 0 }
   0x2   :  { %11 = vsyncpa [#allocation6], 0 }
   0x3   :  { %12 = vsyncpa [#allocation4], 0 }
   0x4   :  { %14 = vsyncpa [#allocation4 + $0x1], 0  ;;  %s1143_s12 = smov 0   ;;  %s1145_s13 = smov 0  }
   0x5   :  { %s1147_s14 = smov 0   ;;  %s1149_s15 = smov 0  }
   0x6   :  { %s1151_s16 = smov 0   ;;  %s1153_s17 = smov 0  }
   0x7 LB: > { %s732_s18 = sadd.s32 4294967295, %s1113_s17   ;;  %s733_s19 = sadd.s32 4294967294, %s1113_s17   ;;  %s1113_s17 = sphi %s1153_s17, %s20_s17   ;;  %s1109_s16 = sphi %s1151_s16, %s1427_s16   ;;  %s1105_s15 = sphi %s1149_s15, %s1426_s15   ;;  %s1101_s14 = sphi %s1147_s14, %s1425_s14   ;;  %s1097_s13 = sphi %s1145_s13, %s1424_s13   ;;  %s1093_s12 = sphi %s1143_s12, %s1423_s12  }
   0x8   : > { %p54_p0 = scmp.ne.s32.totalorder %s1097_s13, %s1093_s12  ;;  %p1177_p1 = scmp.eq.s32.totalorder %s732_s18, 0 }
   0x9   : > { %p1181_p2 = scmp.eq.s32.totalorder %s732_s18, 1  ;;  %p126_p3 = scmp.eq.s32.totalorder %s733_s19, 1 }
   0xa   : > { %s1408_s20 = scalar_select %p1177_p1, 1, 0 }
   0xb   : > { %s1409_s21 = scalar_select %p1181_p2, 1, 0 }
   0xc   : > { %p1187_p4 = por %p1177_p1, %p54_p0  ;;  %p734_p5 = scmp.ge.s32.totalorder %s1113_s17, 1 }
   0xd   : > { %p1192_p6 = por %p126_p3, %p54_p0  ;;  %p133_p7 = scmp.lt.s32.totalorder %s1113_s17, 3 }
   0xe   : > { %s1410_s22 = scalar_select %p1187_p4, 1, 0 }
   0xf   : > { %s1411_s23 = scalar_select %p1192_p6, 1, 0 }
  0x10   : > { %p1197_p8 = pnand %p734_p5, %p133_p7  ;;  %s1115_s25 = smov [#allocation5]  }
  0x11   : > { %s145_s26 = sshll.u32 %s1115_s25, 4  ;;  %s32_s28 = sadd.s32 1, %s1109_s16  ;;  %s146_s26 = int_to_ptr.vmem [resolvable:$true] %s145_s26 }
  0x12   : > { %s1412_s24 = scalar_select %p1197_p8, 1, 0 }
  0x13   : > { %p858_p9 = pneg %p1197_p8  ;;  %s969_s4 = scalar_lea.hbm %s1401_s1, 2048 }
  0x14   : > { %p970_p12 = scmp.ne.s32.totalorder %s1401_s1, %s969_s4  ;;  %p976_p5 = scmp.lt.u32.totalorder %s969_s4, %s1401_s1 }
  0x15   : > { %p1206_p11 = pnand %p858_p9, %p1177_p1 }
  0x17   : > { %p971_p13 = pneg %p1206_p11 }
  0x19   : > { %p972_p0 = pnand %p971_p13, %p970_p12 }
  0x1b   : > { %p973_p3 = pneg %p972_p0 }
  0x1d   : > { %p978_p7 = pnand %p976_p5, %p973_p3 }
  0x1f   : > { %981 = shalt.err (!%p978_p7)
}
  0x20   : > { %s982_s9 = scalar_lea.vmem %s146_s26, 2048  ;;  %p990_p1 = scmp.lt.s32.totalorder %s146_s26, %s146_s26 }
  0x21   : > { %p983_p9 = scmp.ne.s32.totalorder %s146_s26, %s982_s9  ;;  %p991_p4 = scmp.lt.s32.totalorder %s982_s9, %s982_s9 }
  0x23   : > { %p985_p10 = pnand %p983_p9, %p971_p13  ;;  %p992_p8 = por %p991_p4, %p990_p1 }
  0x25   : > { %p986_p6 = pneg %p985_p10 }
  0x27   : > { %p993_p2 = pnand %p992_p8, %p986_p6 }
  0x29   : > { %996 = shalt.err (!%p993_p2)
}
  0x2a   : > { %s1116_s10 = smov 64   ;;  %s1117_s11 = smov 4  }
  0x2b   : > { %861 = dma.hbm_to_vmem [thread:$0]  (!%p1206_p11), %s1401_s1, 2048, %s146_s26, [#allocation6], %s1116_s10, %s1116_s10, %s1117_s11  }
  0x2c   : > { %p34_p1 = scmp.ge.s32.totalorder %s32_s28, 2  ;;  %s41_s25 = sadd.s32 1, %s1101_s14 }
  0x2d   : > { %p48_p2 = scmp.ne.s32.totalorder %s1101_s14, %s1097_s13  ;;  %p49_p4 = scmp.eq.s32.totalorder %s1113_s17, 0 }
  0x2e   : > { %s1429_s28 = smov (%p34_p1, %s32_s28), 0  ;;  %p1415_p8 = scmp.ne.s32.totalorder %s1409_s21, 0 }
  0x2f   : > { %p1233_p6 = por %p49_p4, %p48_p2  ;;  %s38_s27 = ssub.s32 %s1109_s16, %s1429_s28 }
  0x30   : > { %p1239_p10 = por %p1415_p8, %p48_p2  ;;  %p871_p12 = scmp.lt.s32.totalorder %s1113_s17, 2 }
  0x31   : > { %p39_p11 = scmp.eq.s32.totalorder %s38_s27, 0  ;;  %s162_s26 = sand.u32 1, %s1101_s14  }
  0x32   : > { %s737_s4 = sshll.u32 %s162_s26, 7  ;;  %s784_s6 = sshll.u32 %s1109_s16, 11 }
  0x33   : > { %s1248_s5 = scalar_select %p39_p11, %s1101_s14, %s41_s25  }
  0x34   : > { %s1254_s9 = scalar_lea.hbm %s1400_s0, %s784_s6  ;;  %s166_s21 = scalar_lea.vmem [#allocation2], %s737_s4 }
  0x35   : > { %s175_s10 = sshll.u32 %s166_s21, 4  ;;  %p1260_p13 = pnand %p871_p12, %p1233_p6  ;;  %s1256_s10 = int_to_ptr.vmem [resolvable:$true] %s175_s10 }
  0x36   : > { %s1264_s18 = scalar_lea.sflag [#allocation3], %s162_s26  ;;  %s997_s19 = scalar_lea.hbm %s1254_s9, 2048 }
  0x37   : > { %p998_p0 = scmp.ne.s32.totalorder %s1254_s9, %s997_s19  ;;  %p999_p3 = pneg %p1260_p13 }
  0x38   : > { %s1002_s29 = scalar_lea.hbm %s1400_s0, 4096  ;;  %p1003_p9 = scmp.lt.u32.totalorder %s1254_s9, %s1400_s0 }
  0x39   : > { %p1000_p5 = pnand %p999_p3, %p998_p0  ;;  %p1004_p1 = scmp.lt.u32.totalorder %s1002_s29, %s997_s19 }
  0x3a   : > { %p1006_p4 = scmp.lt.u32.totalorder %s997_s19, %s1254_s9 }
  0x3b   : > { %p1001_p7 = pneg %p1000_p5  ;;  %p1005_p2 = por %p1004_p1, %p1003_p9 }
  0x3d   : > { %p1007_p6 = por %p1006_p4, %p1005_p2 }
  0x3f   : > { %p1008_p8 = pnand %p1007_p6, %p1001_p7 }
  0x41   : > { %1011 = shalt.err (!%p1008_p8)
}
  0x42   : > { %s1012_s26 = scalar_lea.vmem %s1256_s10, 2048  ;;  %s1118_s7 = smov [#allocation2]  }
  0x43   : > { %p1013_p12 = scmp.ne.s32.totalorder %s1256_s10, %s1012_s26  ;;  %s1017_s8 = sshll.u32 %s1118_s7, 4  ;;  %s1018_s8 = int_to_ptr.vmem [resolvable:$false] %s1017_s8 }
  0x44   : > { %s1019_s21 = scalar_lea.vmem %s1018_s8, 4096  ;;  %p1020_p5 = scmp.lt.s32.totalorder %s1256_s10, %s1018_s8 }
  0x45   : > { %p1015_p11 = pnand %p1013_p12, %p999_p3  ;;  %p1021_p9 = scmp.lt.s32.totalorder %s1019_s21, %s1012_s26 }
  0x47   : > { %p1016_p0 = pneg %p1015_p11  ;;  %p1022_p1 = por %p1021_p9, %p1020_p5 }
  0x49   : > { %p1023_p2 = pnand %p1022_p1, %p1016_p0 }
  0x4b   : > { %1026 = shalt.err (!%p1023_p2)
}
  0x4c   : > { %s1119_s19 = smov 128   ;;  %s1120_s25 = smov 8  }
  0x4d   : > { %865 = dma.hbm_to_vmem [thread:$0]  (!%p1260_p13), %s1254_s9, 2048, %s1256_s10, %s1264_s18, %s1119_s19, %s1119_s19, %s1120_s25  }
  0x4e   : > { %p1418_p3 = scmp.ne.s32.totalorder %s1412_s24, 0 }
  0x4f   : > { %s1295_s27 = sand.u32 (!%p1418_p3), 1, %s1097_s13   ;;  %p1419_p7 = scmp.ne.s32.totalorder (!%p1418_p3), %s1410_s22, 0 }
  0x50   : > { %187 = sbr.rel (%p1418_p3) target bundleno = 704 (0x2c0), region = 32  ;;  %s742_s29 = sshll.u32 (!%p1418_p3), %s1295_s27, 7 }
  0x51   : > { %s190_s4 = scalar_lea.sflag (!%p1418_p3), [#allocation3], %s1295_s27  ;;  %s1299_s6 = scalar_lea.vmem (!%p1418_p3), [#allocation2], %s742_s29 }
  0x57   : > { %1080 = dma.done.wait (%p1419_p7), %s190_s4, 2048  }
  0x58   : > { %1082 = vsyncadd (%p1419_p7), %s190_s4, 4294965248  ;;  %p1420_p13 = scmp.ne.s32.totalorder %s1408_s20, 0 }
  0x5a   : > { %1084 = dma.done.wait (%p1420_p13), [#allocation6], 2048  }
  0x5b   : > { %1086 = vsyncadd (%p1420_p13), [#allocation6], 4294965248  ;;  %v929_v0 = vld [vmem:[#allocation5 + $0x40] sm:$0xff]   ;;  %v931_v2 = vld [vmem:[#allocation5 + $0x48] sm:$0xff]   ;;  %v1121_v48 = vmov 0   ;;  %s744_s24 = sshll.u32 %s1295_s27, 4 }
  0x5c   : > { %v930_v1 = vld [vmem:[#allocation5] sm:$0xff]   ;;  %786 = vmatprep.subr.bf16.mxu0 %v929_v0  ;;  %v932_v3 = vld [vmem:[#allocation5 + $0x8] sm:$0xff]   ;;  %v933_v4 = vld [vmem:[#allocation5 + $0x50] sm:$0xff]   ;;  %615 = vmatprep.mubr.bf16.mxu1 %v1121_v48  ;;  %s785_s9 = sshll.u32 %s1105_s15, 8  ;;  %s219_s10 = scalar_lea.vmem [#allocation7], %s744_s24 }
  0x5d   : > { %787 = vmatpush3.bf16.msra.mxu0 %v930_v1  ;;  %v934_v5 = vld [vmem:[#allocation5 + $0x10] sm:$0xff]   ;;  %v935_v6 = vld [vmem:[#allocation5 + $0x58] sm:$0xff]   ;;  %v937_v8 = vld [vmem:[#allocation5 + $0x60] sm:$0xff]   ;;  %s643_s11 = sshll.u32 %s219_s10, 4  ;;  %s1351_s7 = scalar_lea.hbm %s1403_s3, %s785_s9  ;;  %s1353_s11 = int_to_ptr.vmem [resolvable:$true] %s643_s11 }
  0x5e   : > { %788 = vmatprep.subr.bf16.mxu0 %v931_v2  ;;  %v936_v7 = vld [vmem:[#allocation5 + $0x18] sm:$0xff]   ;;  %v938_v9 = vld [vmem:[#allocation5 + $0x20] sm:$0xff]   ;;  %v939_v10 = vld [vmem:[#allocation5 + $0x68] sm:$0xff]   ;;  %s629_s8 = scalar_lea.sflag [#allocation4], %s1295_s27  ;;  %s1027_s15 = scalar_lea.vmem %s1353_s11, 256 }
  0x5f   : > { %v947_v11 = vld [vmem:[%s1299_s6 + $0x4] ss:$8 sps:$4 sm:$0xff]   ;;  %v941_v13 = vld [vmem:[#allocation5 + $0x70] sm:$0xff]   ;;  %v945_v14 = vld [vmem:[%s1299_s6] ss:$8 sps:$4 sm:$0xff]   ;;  %p1028_p4 = scmp.ne.s32.totalorder %s1353_s11, %s1027_s15  ;;  %s1122_s21 = smov [#allocation7]  }
  0x60   : > { %v940_v12 = vld [vmem:[#allocation5 + $0x28] sm:$0xff]   ;;  %492 = vmatprep.mubr.bf16.mxu0 %v947_v11  ;;  %v948_v15 = vld [vmem:[%s1299_s6 + $0x14] ss:$8 sps:$4 sm:$0xff]   ;;  %583 = vmatprep.subr.bf16.mxu1 %v947_v11  ;;  %v950_v18 = vld [vmem:[%s1299_s6 + $0x10] ss:$8 sps:$4 sm:$0xff]   ;;  %s1031_s19 = sshll.u32 %s1122_s21, 4  ;;  %s1032_s19 = int_to_ptr.vmem [resolvable:$false] %s1031_s19 }
  0x61   : > { %789 = vmatpush3.bf16.msra.mxu0 %v932_v3  ;;  %584 = vmatpush1.bf16.msra.mxu1 %v945_v14  ;;  %v942_v16 = vld [vmem:[#allocation5 + $0x30] sm:$0xff]   ;;  %v943_v17 = vld [vmem:[#allocation5 + $0x78] sm:$0xff]   ;;  %v951_v19 = vld [vmem:[%s1299_s6 + $0x24] ss:$8 sps:$4 sm:$0xff]   ;;  %p1029_p6 = pnand %p1028_p4, %p1239_p10  ;;  %s1033_s25 = scalar_lea.vmem %s1032_s19, 512 }
  0x62   : > { %790 = vmatprep.subr.bf16.mxu0 %v933_v4  ;;  %585 = vmatprep.subr.bf16.mxu1 %v948_v15  ;;  %v944_v20 = vld [vmem:[#allocation5 + $0x38] sm:$0xff]   ;;  %v953_v21 = vld [vmem:[%s1299_s6 + $0x20] ss:$8 sps:$4 sm:$0xff]   ;;  %v957_v24 = vld [vmem:[%s1299_s6 + $0x44] ss:$8 sps:$4 sm:$0xff]   ;;  %p1034_p12 = scmp.lt.s32.totalorder %s1353_s11, %s1032_s19  ;;  %p1035_p11 = scmp.lt.s32.totalorder %s1033_s25, %s1027_s15 }
  0x63   : > { %v954_v22 = vld [vmem:[%s1299_s6 + $0x34] ss:$8 sps:$4 sm:$0xff]   ;;  %v956_v23 = vld [vmem:[%s1299_s6 + $0x30] ss:$8 sps:$4 sm:$0xff]   ;;  %v959_v25 = vld [vmem:[%s1299_s6 + $0x40] ss:$8 sps:$4 sm:$0xff]   ;;  %p1030_p8 = pneg %p1029_p6 }
  0x64   : > { %v960_v26 = vld [vmem:[%s1299_s6 + $0x54] ss:$8 sps:$4 sm:$0xff]   ;;  %v962_v27 = vld [vmem:[%s1299_s6 + $0x50] ss:$8 sps:$4 sm:$0xff]   ;;  %v963_v28 = vld [vmem:[%s1299_s6 + $0x64] ss:$8 sps:$4 sm:$0xff]   ;;  %p1036_p0 = por %p1035_p11, %p1034_p12 }
  0x65   : > { %791 = vmatpush3.bf16.msra.mxu0 %v934_v5  ;;  %586 = vmatpush1.bf16.msra.mxu1 %v950_v18  ;;  %v965_v29 = vld [vmem:[%s1299_s6 + $0x60] ss:$8 sps:$4 sm:$0xff]   ;;  %v966_v30 = vld [vmem:[%s1299_s6 + $0x74] ss:$8 sps:$4 sm:$0xff]   ;;  %v968_v31 = vld [vmem:[%s1299_s6 + $0x70] ss:$8 sps:$4 sm:$0xff]  }
  0x66   : > { %792 = vmatprep.subr.bf16.mxu0 %v935_v6  ;;  %587 = vmatprep.subr.bf16.mxu1 %v951_v19  ;;  %v1328_v37 = vld [vmem:[%s1402_s2] ss:$0 sm:$0xff]  ;;  %p1037_p5 = pnand %p1036_p0, %p1030_p8 }
  0x69   : > { %793 = vmatpush3.bf16.msra.mxu0 %v936_v7  ;;  %588 = vmatpush1.bf16.msra.mxu1 %v953_v21 }
  0x6a   : > { %794 = vmatprep.subr.bf16.mxu0 %v937_v8  ;;  %589 = vmatprep.subr.bf16.mxu1 %v954_v22 }
  0x6d   : > { %795 = vmatpush3.bf16.msra.mxu0 %v938_v9  ;;  %590 = vmatpush1.bf16.msra.mxu1 %v956_v23 }
  0x6e   : > { %796 = vmatprep.subr.bf16.mxu0 %v939_v10  ;;  %591 = vmatprep.subr.bf16.mxu1 %v957_v24 }
  0x71   : > { %797 = vmatpush3.bf16.msra.mxu0 %v940_v12  ;;  %592 = vmatpush1.bf16.msra.mxu1 %v959_v25 }
  0x72   : > { %798 = vmatprep.subr.bf16.mxu0 %v941_v13  ;;  %593 = vmatprep.subr.bf16.mxu1 %v960_v26 }
  0x75   : > { %799 = vmatpush3.bf16.msra.mxu0 %v942_v16  ;;  %594 = vmatpush1.bf16.msra.mxu1 %v962_v27 }
  0x76   : > { %800 = vmatprep.subr.bf16.mxu0 %v943_v17  ;;  %595 = vmatprep.subr.bf16.mxu1 %v963_v28 }
  0x79   : > { %801 = vmatpush3.bf16.msra.mxu0 %v944_v20  ;;  %596 = vmatpush1.bf16.msra.mxu1 %v965_v29 }
  0x7a   : > { %597 = vmatprep.subr.bf16.mxu1 %v966_v30 }
  0x7c   : > { %493 = vmatmul.mubr.bf16.vlgmr.msra.gmra.mrb[0].mxu0 %v945_v14 }
  0x7d   : > { %500 = vmatprep.mubr.bf16.mxu0 %v948_v15  ;;  %598 = vmatpush1.bf16.msra.mxu1 %v968_v31 }
  0x84   : > { %501 = vmatmul.mubr.bf16.gmra.mrb[4].mxu0 %v950_v18 }
  0x85   : > { %508 = vmatprep.mubr.bf16.mxu0 %v951_v19 }
  0x8c   : > { %509 = vmatmul.mubr.bf16.gmra.mrb[8].mxu0 %v953_v21 }
  0x8d   : > { %516 = vmatprep.mubr.bf16.mxu0 %v954_v22 }
  0x94   : > { %517 = vmatmul.mubr.bf16.gmra.mrb[12].mxu0 %v956_v23 }
  0x95   : > { %524 = vmatprep.mubr.bf16.mxu0 %v957_v24 }
  0x9c   : > { %525 = vmatmul.mubr.bf16.gmra.mrb[16].mxu0 %v959_v25 }
  0x9d   : > { %532 = vmatprep.mubr.bf16.mxu0 %v960_v26 }
  0xa4   : > { %533 = vmatmul.mubr.bf16.gmra.mrb[20].mxu0 %v962_v27 }
  0xa5   : > { %540 = vmatprep.mubr.bf16.mxu0 %v963_v28 }
  0xac   : > { %541 = vmatmul.mubr.bf16.gmra.mrb[24].mxu0 %v965_v29 }
  0xad   : > { %548 = vmatprep.mubr.bf16.mxu0 %v966_v30 }
  0xb4   : > { %549 = vmatmul.mubr.bf16.gmra.mrb[28].mxu0 %v968_v31 }
 0x14f   : > { %v802_v32 = vpop.f32.mrb[0].mxu0 }
 0x150   : > { %v803_v33 = vpop.f32.mrb[1].mxu0 }
 0x151   : > { %v804_v34 = vadd.f32 %v803_v33, %v802_v32  ;;  %v805_v35 = vpop.f32.mrb[2].mxu0 }
 0x152   : > { %v806_v36 = vpop.f32.mrb[3].mxu0 }
 0x153   : > { %v807_v38 = vadd.f32 %v806_v36, %v805_v35  ;;  %v495_v39 = vadd.f32 %v804_v34, %v1328_v37 }
 0x155   : > { %v498_v40 = vadd.f32 %v807_v38, %v1328_v37 }
 0x157   : > { %v808_v41 = vpop.f32.mrb[4].mxu0  ;;  %v557_v42 = vpack.c.bf16 %v498_v40, %v495_v39 }
 0x158   : > { %v809_v43 = vpop.f32.mrb[5].mxu0 }
 0x159   : > { %v810_v44 = vadd.f32 %v809_v43, %v808_v41  ;;  %v811_v45 = vpop.f32.mrb[6].mxu0  ;;  %567 = vxpose.xlu0.c.b16.start [1/8] (narrow) %v557_v42, 16 }
 0x15a   : > { %v812_v46 = vpop.f32.mrb[7].mxu0 }
 0x15b   : > { %v813_v47 = vadd.f32 %v812_v46, %v811_v45  ;;  %v503_v49 = vadd.f32 %v810_v44, %v1328_v37 }
 0x15d   : > { %v506_v50 = vadd.f32 %v813_v47, %v1328_v37 }
 0x15f   : > { %v814_v51 = vpop.f32.mrb[8].mxu0  ;;  %v558_v52 = vpack.c.bf16 %v506_v50, %v503_v49 }
 0x160   : > { %v815_v53 = vpop.f32.mrb[9].mxu0 }
 0x161   : > { %v816_v54 = vadd.f32 %v815_v53, %v814_v51  ;;  %v817_v55 = vpop.f32.mrb[10].mxu0  ;;  %568 = vxpose.xlu0.c.b16.cont [2/8] (narrow) %v558_v52, 16 }
 0x162   : > { %v818_v56 = vpop.f32.mrb[11].mxu0 }
 0x163   : > { %v819_v57 = vadd.f32 %v818_v56, %v817_v55  ;;  %v511_v58 = vadd.f32 %v816_v54, %v1328_v37 }
 0x165   : > { %v514_v59 = vadd.f32 %v819_v57, %v1328_v37 }
 0x167   : > { %v820_v60 = vpop.f32.mrb[12].mxu0  ;;  %v559_v61 = vpack.c.bf16 %v514_v59, %v511_v58 }
 0x168   : > { %v821_v62 = vpop.f32.mrb[13].mxu0 }
 0x169   : > { %v822_v63 = vadd.f32 %v821_v62, %v820_v60  ;;  %v823_v0 = vpop.f32.mrb[14].mxu0  ;;  %569 = vxpose.xlu0.c.b16.cont [3/8] (narrow) %v559_v61, 16 }
 0x16a   : > { %v824_v1 = vpop.f32.mrb[15].mxu0 }
 0x16b   : > { %v825_v2 = vadd.f32 %v824_v1, %v823_v0  ;;  %v519_v3 = vadd.f32 %v822_v63, %v1328_v37 }
 0x16d   : > { %v522_v4 = vadd.f32 %v825_v2, %v1328_v37 }
 0x16f   : > { %v826_v5 = vpop.f32.mrb[16].mxu0  ;;  %v560_v6 = vpack.c.bf16 %v522_v4, %v519_v3 }
 0x170   : > { %v827_v7 = vpop.f32.mrb[17].mxu0 }
 0x171   : > { %v828_v8 = vadd.f32 %v827_v7, %v826_v5  ;;  %v829_v9 = vpop.f32.mrb[18].mxu0  ;;  %570 = vxpose.xlu0.c.b16.cont [4/8] (narrow) %v560_v6, 16 }
 0x172   : > { %v830_v10 = vpop.f32.mrb[19].mxu0 }
 0x173   : > { %v831_v11 = vadd.f32 %v830_v10, %v829_v9  ;;  %v527_v12 = vadd.f32 %v828_v8, %v1328_v37 }
 0x175   : > { %v530_v13 = vadd.f32 %v831_v11, %v1328_v37 }
 0x177   : > { %v832_v14 = vpop.f32.mrb[20].mxu0  ;;  %v561_v15 = vpack.c.bf16 %v530_v13, %v527_v12 }
 0x178   : > { %v833_v16 = vpop.f32.mrb[21].mxu0 }
 0x179   : > { %v834_v17 = vadd.f32 %v833_v16, %v832_v14  ;;  %v835_v18 = vpop.f32.mrb[22].mxu0  ;;  %571 = vxpose.xlu0.c.b16.cont [5/8] (narrow) %v561_v15, 16 }
 0x17a   : > { %v836_v19 = vpop.f32.mrb[23].mxu0 }
 0x17b   : > { %v837_v20 = vadd.f32 %v836_v19, %v835_v18  ;;  %v535_v21 = vadd.f32 %v834_v17, %v1328_v37 }
 0x17d   : > { %v538_v22 = vadd.f32 %v837_v20, %v1328_v37 }
 0x17f   : > { %v838_v23 = vpop.f32.mrb[24].mxu0  ;;  %v562_v24 = vpack.c.bf16 %v538_v22, %v535_v21 }
 0x180   : > { %v839_v25 = vpop.f32.mrb[25].mxu0 }
 0x181   : > { %v840_v26 = vadd.f32 %v839_v25, %v838_v23  ;;  %v841_v27 = vpop.f32.mrb[26].mxu0  ;;  %572 = vxpose.xlu0.c.b16.cont [6/8] (narrow) %v562_v24, 16 }
 0x182   : > { %v842_v28 = vpop.f32.mrb[27].mxu0 }
 0x183   : > { %v843_v29 = vadd.f32 %v842_v28, %v841_v27  ;;  %v543_v30 = vadd.f32 %v840_v26, %v1328_v37 }
 0x185   : > { %v546_v31 = vadd.f32 %v843_v29, %v1328_v37 }
 0x187   : > { %v844_v32 = vpop.f32.mrb[28].mxu0  ;;  %v563_v33 = vpack.c.bf16 %v546_v31, %v543_v30 }
 0x188   : > { %v845_v34 = vpop.f32.mrb[29].mxu0 }
 0x189   : > { %v846_v35 = vadd.f32 %v845_v34, %v844_v32  ;;  %v847_v36 = vpop.f32.mrb[30].mxu0  ;;  %573 = vxpose.xlu0.c.b16.cont [7/8] (narrow) %v563_v33, 16 }
 0x18a   : > { %v848_v38 = vpop.f32.mrb[31].mxu0 }
 0x18b   : > { %v849_v39 = vadd.f32 %v848_v38, %v847_v36  ;;  %v551_v40 = vadd.f32 %v846_v35, %v1328_v37 }
 0x18d   : > { %v554_v41 = vadd.f32 %v849_v39, %v1328_v37 }
 0x18f   : > { %v564_v42 = vpack.c.bf16 %v554_v41, %v551_v40 }
 0x191   : > { %574 = vxpose.xlu0.c.b16.end [8/8] (narrow) %v564_v42, 16 }
 0x1db   : > { %v575_v43 = vpop.trf.xlu0 }
 0x1dc   : > { %616 = vmatmul.mubr.bf16.vlgmr.msra.gmra.mrb[0].mxu1 %v575_v43 }
 0x2af   : > { %v617_v44 = vpop.f32.mrb[0].mxu1 }
 0x2b0   : > { %v619_v45 = vpop.f32.mrb[1].mxu1  ;;  %626 = vst [vmem:[%s219_s10] sm:$0xff] %v617_v44 }
 0x2b1   : > { %v621_v46 = vpop.f32.mrb[2].mxu1  ;;  %627 = vst [vmem:[%s219_s10 + $0x8] sm:$0xff] %v619_v45 }
 0x2b2   : > { %v622_v37 = vpop.f32.mrb[3].mxu1 }
 0x2b3   : > { %1040 = shalt.err (!%p1037_p5)
}
 0x2b4   : > { %s1041_s27 = scalar_lea.hbm %s1351_s7, 256  ;;  %s1045_s6 = scalar_lea.hbm %s1403_s3, 512 }
 0x2b5   : > { %p1042_p9 = scmp.ne.s32.totalorder %s1351_s7, %s1041_s27  ;;  %p1046_p3 = scmp.lt.u32.totalorder %s1351_s7, %s1403_s3 }
 0x2b6   : > { %p1047_p7 = scmp.lt.u32.totalorder %s1045_s6, %s1041_s27  ;;  %p1049_p4 = scmp.lt.u32.totalorder %s1041_s27, %s1351_s7 }
 0x2b7   : > { %p1043_p1 = pnand %p1042_p9, %p1239_p10 }
 0x2b8   : > { %p1048_p13 = por %p1047_p7, %p1046_p3 }
 0x2b9   : > { %p1044_p2 = pneg %p1043_p1 }
 0x2ba   : > { %p1050_p6 = por %p1049_p4, %p1048_p13 }
 0x2bc   : > { %p1051_p8 = pnand %p1050_p6, %p1044_p2 }
 0x2be   : > { %1054 = shalt.err (!%p1051_p8)
}
 0x2bf   : > { %856 = dma.vmem_to_hbm [thread:$0]  (%p1239_p10), %s1353_s11, 256, %s1351_s7, %s629_s8  }
 0x2c0 PF: > { %s655_s24 = sand.u32 1, %s1093_s12   ;;  %p1421_p12 = scmp.ne.s32.totalorder %s1411_s23, 0 }
 0x2c1   : > { %p1422_p11 = scmp.ge.s32.totalorder %s1113_s17, 2  ;;  %s656_s9 = scalar_lea.sflag [#allocation4], %s655_s24 }
 0x2c3   : > { %p867_p0 = pnand %p1422_p11, %p1421_p12 }
 0x2c5   : > { %1088 = dma.done.wait (!%p867_p0), %s656_s9, 256  }
 0x2c6   : > { %1090 = vsyncadd (!%p867_p0), %s656_s9, 4294967040  ;;  %s20_s17 = sadd.s32 1, %s1113_s17   ;;  %s1423_s12 = smov %s1097_s13 }
 0x2c7   : > { %p17_p5 = scmp.ge.s32.totalorder %s20_s17, 4   ;;  %s1424_s13 = smov %s1101_s14 }
 0x2c8   : > { %s1425_s14 = smov %s1248_s5  ;;  %s1426_s15 = smov %s1109_s16 }
 0x2c9   : > { %s1427_s16 = smov %s1429_s28  ;;  %19 = sbr.rel (!%p17_p5) target bundleno = 7 (0x7), region = 85 }
 0x2d0   :  { %661 = vsyncpa [#allocation3], 1 }
 0x2d1   :  { %663 = vsyncpa [#allocation3 + $0x1], 1 }
 0x2d2   :  { %664 = vsyncpa [#allocation6], 1 }
 0x2d3   :  { %665 = vsyncpa [#allocation4], 1 }
 0x2d4   :  { %667 = vsyncpa [#allocation4 + $0x1], 1 }

</bundles_post_ra>
